<compile_context>
chip_gen: v6e
topology: v6e:2x2x1
jax: 0.10.0
libtpu: 0.0.40
codegen_flags: <defaults>
</compile_context>

<pallas_src>
import functools

import jax
import jax.numpy as jnp
from jax.experimental import pallas as pl
from jax.experimental.pallas import tpu as pltpu


def _round_up(x, m):
    return ((x + m - 1) // m) * m


# ---------------------------------------------------------------------------
# Kernel
# ---------------------------------------------------------------------------
def _dqn_mlp_kernel(*refs, n_mid):
    """Fused padded MLP forward for one batch tile.

    Operands (zero-padded to lane multiples; padding is self-consistent, so the
    padded columns stay exactly zero through every layer and the real columns
    are exact):
      x_ref   (TB, S_pad)     f32 activations
      wf_ref  (S_pad, F)      first-layer weight, pre-transposed to (in, out)
      bh_ref  (L-1, F)        biases of the first + middle layers (f32)
      wm_ref  (n_mid, F, F)   middle-layer weights (operand absent if n_mid == 0)
      wl_ref  (F, A_pad)      last-layer weight
      bl_ref  (1, A_pad)      last-layer bias (f32)
      o_ref   (TB, A_pad)     padded Q-values; real values in [:, :action_dim]
    """
    if n_mid > 0:
        x_ref, wf_ref, bh_ref, wm_ref, wl_ref, bl_ref, o_ref = refs
    else:
        x_ref, wf_ref, bh_ref, wl_ref, bl_ref, o_ref = refs
        wm_ref = None
    wdt = wf_ref.dtype

    # First layer: (TB, S_pad) @ (S_pad, F) -> (TB, F), MXU with f32 accumulation.
    h = jnp.dot(x_ref[...].astype(wdt), wf_ref[...],
                preferred_element_type=jnp.float32)
    h = jnp.maximum(h + bh_ref[pl.ds(0, 1), :], 0.0)

    # Middle layers: static unrolled loop, per-layer bias indexed on demand.
    for li in range(n_mid):
        y = jnp.dot(h.astype(wdt), wm_ref[li],
                    preferred_element_type=jnp.float32)
        h = jnp.maximum(y + bh_ref[pl.ds(li + 1, 1), :], 0.0)

    # Last layer: (TB, F) @ (F, A_pad) -> (TB, A_pad); lane-dense unmasked store.
    y = jnp.dot(h.astype(wdt), wl_ref[...], preferred_element_type=jnp.float32)
    o_ref[...] = (y + bl_ref[...]).astype(o_ref.dtype)


# ---------------------------------------------------------------------------
# One-time parameter preparation (hoisted out of the per-call path)
# ---------------------------------------------------------------------------
def prepare_dqn_params(weights, biases, *, param_dtype=jnp.bfloat16, lane=128):
    """Pack PyTorch-convention (out, in) weights into per-layer padded blocks."""
    dims = [weights[0].shape[1]] + [w.shape[0] for w in weights]
    L = len(weights)
    assert L >= 2, "prepare_dqn_params expects at least one hidden layer"
    state_dim, action_dim = dims[0], dims[-1]
    hidden = dims[1:-1]
    S_pad = _round_up(state_dim, lane)
    A_pad = _round_up(action_dim, lane)
    F = _round_up(max(hidden), lane)
    n_mid = L - 2

    w_first = jnp.zeros((S_pad, F), param_dtype).at[:state_dim, :dims[1]].set(
        jnp.transpose(weights[0]).astype(param_dtype))

    b_hid = jnp.zeros((L - 1, F), jnp.float32)
    for i in range(L - 1):
        b_hid = b_hid.at[i, :dims[i + 1]].set(biases[i].astype(jnp.float32))

    params = {"w_first": w_first, "b_hid": b_hid}

    if n_mid > 0:
        w_mid = jnp.zeros((n_mid, F, F), param_dtype)
        for i in range(n_mid):
            li = i + 1
            w_mid = w_mid.at[i, :dims[li], :dims[li + 1]].set(
                jnp.transpose(weights[li]).astype(param_dtype))
        params["w_mid"] = w_mid

    params["w_last"] = jnp.zeros((F, A_pad), param_dtype).at[
        :dims[-2], :action_dim].set(jnp.transpose(weights[-1]).astype(param_dtype))
    params["b_last"] = jnp.zeros((1, A_pad), jnp.float32).at[
        0, :action_dim].set(biases[-1].astype(jnp.float32))

    meta = dict(state_dim=state_dim, action_dim=action_dim,
                s_pad=S_pad, a_pad=A_pad, feature_dim=F,
                n_layers=L, n_mid=n_mid)
    return params, meta


def _vmem_capacity_bytes():
    """Generation-aware physical VMEM (v5e/v6e: 128 MiB; v7x: 64 MiB per core)."""
    try:
        cap = int(getattr(pltpu.get_tpu_info(), "vmem_capacity_bytes", 0))
        if cap > 0:
            return cap
    except Exception:
        pass
    return 64 << 20  # conservative fallback (v7x per-core)


# ---------------------------------------------------------------------------
# Forward wrapper
# ---------------------------------------------------------------------------
def dqn_forward(x, params, meta, *, batch_tile=None):
    """Run the fused DQN MLP Pallas kernel on a (B, state_dim) batch."""
    B = x.shape[0]
    S_pad, A_pad, F = meta["s_pad"], meta["a_pad"], meta["feature_dim"]
    n_mid = meta["n_mid"]
    state_dim, action_dim = meta["state_dim"], meta["action_dim"]

    # Megacore-aware batch tiling: for batches big enough to split, force a
    # >= 2-step batch grid so the "parallel" axis can shard across v7x's 2 TCs.
    Bp = _round_up(B, 8)
    if batch_tile is not None:
        tb = batch_tile
    elif Bp > 16:
        tb = min(256, _round_up(-(-Bp // 2), 8))
    else:
        tb = Bp
    tb = max(8, _round_up(min(tb, Bp), 8))
    Bp = _round_up(Bp, tb)

    # Narrow, lane-dense streamed activations: only S_pad input and A_pad output
    # columns travel over HBM (not the full hidden width F).
    x_p = jnp.zeros((Bp, S_pad), jnp.float32).at[:B, :state_dim].set(
        x.astype(jnp.float32))

    grid = (Bp // tb,)
    resident = pl.Buffered(1)  # constant index map -> single resident buffer

    operands = [x_p, params["w_first"], params["b_hid"]]
    in_specs = [
        pl.BlockSpec((tb, S_pad), lambda i: (i, 0)),                 # streamed
        pl.BlockSpec((S_pad, F), lambda i: (0, 0), pipeline_mode=resident),
        pl.BlockSpec((meta["n_layers"] - 1, F), lambda i: (0, 0),
                     pipeline_mode=resident),
    ]
    if n_mid > 0:
        operands.append(params["w_mid"])
        in_specs.append(pl.BlockSpec((n_mid, F, F), lambda i: (0, 0, 0),
                                     pipeline_mode=resident))
    operands += [params["w_last"], params["b_last"]]
    in_specs += [
        pl.BlockSpec((F, A_pad), lambda i: (0, 0), pipeline_mode=resident),
        pl.BlockSpec((1, A_pad), lambda i: (0, 0), pipeline_mode=resident),
    ]

    # FLOP / byte accounting for the scheduler hint and the VMEM budget.
    param_bytes = sum(int(v.size * v.dtype.itemsize) for v in params.values())
    act_in_bytes = tb * S_pad * 4
    act_out_bytes = tb * A_pad * 4
    hid_bytes = tb * F * 4
    flops = 2 * Bp * (S_pad * F + n_mid * F * F + F * A_pad)
    bytes_accessed = Bp * (S_pad + A_pad) * 4 + param_bytes

    # Generation-aware VMEM budget: single-buffered resident params +
    # double-buffered streamed tiles + hidden-activation headroom, capped at
    # 75% of physical per-core VMEM (~96 MiB on v5e/v6e, ~48 MiB on v7x).
    needed = (param_bytes + 2 * (act_in_bytes + act_out_bytes)
              + 2 * hid_bytes + (2 << 20))
    vmem_limit = int(min(max(needed, 8 << 20),
                         int(0.75 * _vmem_capacity_bytes())))

    kernel = functools.partial(_dqn_mlp_kernel, n_mid=n_mid)

    out_p = pl.pallas_call(
        kernel,
        out_shape=jax.ShapeDtypeStruct((Bp, A_pad), jnp.float32),
        grid=grid,
        in_specs=in_specs,
        out_specs=pl.BlockSpec((tb, A_pad), lambda i: (i, 0)),
        compiler_params=pltpu.CompilerParams(
            dimension_semantics=("parallel",),
            vmem_limit_bytes=vmem_limit,
        ),
        cost_estimate=pl.CostEstimate(
            flops=int(flops), transcendentals=0,
            bytes_accessed=int(bytes_accessed)),
    )(*operands)

    # TODO(synk): for very large F where even single-buffered weights exceed the
    # per-core VMEM budget, add an "arbitrary" grid axis tiling the hidden
    # weights along their output dim with a VMEM accumulator (pl.when init/fin).
    return out_p[:B, :action_dim]


# ---------------------------------------------------------------------------
# Reference + synthetic init
# ---------------------------------------------------------------------------
def init_dqn_params(key, state_dim, action_dim, hidden_sizes):
    """Deterministic synthetic init mirroring the PyTorch layer shapes."""
    dims = [state_dim] + list(hidden_sizes) + [action_dim]
    weights, biases = [], []
    for i in range(len(dims) - 1):
        key, kw, kb = jax.random.split(key, 3)
        bound = 1.0 / jnp.sqrt(jnp.float32(dims[i]))
        w = jax.random.uniform(kw, (dims[i + 1], dims[i]), jnp.float32,
                               minval=-bound, maxval=bound)
        b = jax.random.uniform(kb, (dims[i + 1],), jnp.float32,
                               minval=-bound, maxval=bound)
        weights.append(w)
        biases.append(b)
    return weights, biases


def dqn_reference(x, weights, biases):
    """Plain-JAX reference of the PyTorch forward for verification."""
    h = x
    n = len(weights)
    for i, (w, b) in enumerate(zip(weights, biases)):
        h = h @ w.T + b
        if i < n - 1:
            h = jnp.maximum(h, 0.0)
    return h


if __name__ == "__main__":
    # Small shapes consistent with the module: batch=2, state_dim=8,
    # hidden_sizes=(32, 32), action_dim=4.
    state_dim, action_dim, hidden_sizes = 8, 4, (32, 32)
    batch = 2

    key = jax.random.PRNGKey(0)
    key, kx = jax.random.split(key)
    x = jax.random.normal(kx, (batch, state_dim), jnp.float32)
    weights, biases = init_dqn_params(key, state_dim, action_dim, hidden_sizes)

    ref = dqn_reference(x, weights, biases)

    # f32 parameters: strict correctness check.
    params_f32, meta_f32 = prepare_dqn_params(weights, biases,
                                              param_dtype=jnp.float32)
    apply_f32 = jax.jit(functools.partial(dqn_forward, meta=meta_f32))
    out = jax.block_until_ready(apply_f32(x, params_f32))
    assert out.shape == (batch, action_dim)
    assert jnp.allclose(out, ref, atol=1e-5, rtol=1e-5), "f32 mismatch vs reference"

    # bf16 weights (default; f32 MXU accumulation): bandwidth-oriented fast path.
    # Note: activations are rounded to bf16 at each layer, so error compounds
    # mildly with depth — acceptable for DQN Q-values.
    params_bf16, meta_bf16 = prepare_dqn_params(weights, biases)
    apply_bf16 = jax.jit(functools.partial(dqn_forward, meta=meta_bf16))
    out_bf16 = jax.block_until_ready(apply_bf16(x, params_bf16))
    assert out_bf16.shape == (batch, action_dim)
    assert jnp.allclose(out_bf16, ref, atol=1e-1, rtol=1e-1), "bf16 mismatch vs reference"

    # TODO(synk): optionally fuse the epsilon-greedy argmax over actions into the
    # kernel epilogue when used in the acting loop (forward semantics kept as-is).
    print("KERNEL_OK")
</pallas_src>

<mosaic_0001>
module attributes {stable_mosaic.version = 11 : i64} {
  func.func @_dqn_mlp_kernel(%arg0: i32, %arg1: memref<8x128xf32, #tpu.memory_space<vmem>>, %arg2: memref<128x128xf32, #tpu.memory_space<vmem>>, %arg3: memref<2x128xf32, #tpu.memory_space<vmem>>, %arg4: memref<1x128x128xf32, #tpu.memory_space<vmem>>, %arg5: memref<128x128xf32, #tpu.memory_space<vmem>>, %arg6: memref<1x128xf32, #tpu.memory_space<vmem>>, %arg7: memref<8x128xf32, #tpu.memory_space<vmem>>) attributes {dimension_semantics = [#tpu.dimension_semantics<parallel>], iteration_bounds = array<i64: 1>, scalar_prefetch = 0 : i64, scratch_operands = 0 : i64, tpu.core_type = #tpu.core_type<tc>, window_params = [{transform_indices = @transform_0, window_bounds = array<i64: 8, 128>}, {pipeline_mode = #tpu.pipeline_mode<synchronous>, transform_indices = @transform_1, window_bounds = array<i64: 128, 128>}, {pipeline_mode = #tpu.pipeline_mode<synchronous>, transform_indices = @transform_2, window_bounds = array<i64: 2, 128>}, {pipeline_mode = #tpu.pipeline_mode<synchronous>, transform_indices = @transform_3, window_bounds = array<i64: 1, 128, 128>}, {pipeline_mode = #tpu.pipeline_mode<synchronous>, transform_indices = @transform_4, window_bounds = array<i64: 128, 128>}, {pipeline_mode = #tpu.pipeline_mode<synchronous>, transform_indices = @transform_5, window_bounds = array<i64: 1, 128>}, {transform_indices = @transform_6, window_bounds = array<i64: 8, 128>}]} {
    %c0 = arith.constant 0 : index
    %c0_0 = arith.constant 0 : index
    %0 = vector.load %arg1[%c0, %c0_0] : memref<8x128xf32, #tpu.memory_space<vmem>>, vector<8x128xf32>
    %c0_1 = arith.constant 0 : index
    %c0_2 = arith.constant 0 : index
    %1 = vector.load %arg2[%c0_1, %c0_2] : memref<128x128xf32, #tpu.memory_space<vmem>>, vector<128x128xf32>
    %cst = arith.constant dense<0.000000e+00> : vector<8x128xf32>
    %2 = tpu.matmul %0, %1, %cst {dimension_numbers = #tpu.dot_dimension_numbers<[1], [0], [0], [1], [0, 0, 1, 1], [], []>} : vector<8x128xf32>, vector<128x128xf32>, vector<8x128xf32> -> vector<8x128xf32>
    %c0_3 = arith.constant 0 : index
    %c0_4 = arith.constant 0 : index
    %3 = vector.load %arg3[%c0_3, %c0_4] : memref<2x128xf32, #tpu.memory_space<vmem>>, vector<1x128xf32>
    %4 = vector.broadcast %3 : vector<1x128xf32> to vector<8x128xf32>
    %5 = arith.addf %2, %4 : vector<8x128xf32>
    %cst_5 = arith.constant 0.000000e+00 : f32
    %6 = vector.broadcast %cst_5 : f32 to vector<8x128xf32>
    %7 = arith.maximumf %5, %6 : vector<8x128xf32>
    %c0_6 = arith.constant 0 : index
    %c0_7 = arith.constant 0 : index
    %c0_8 = arith.constant 0 : index
    %8 = vector.load %arg4[%c0_6, %c0_7, %c0_8] : memref<1x128x128xf32, #tpu.memory_space<vmem>>, vector<1x128x128xf32>
    %9 = vector.shape_cast %8 : vector<1x128x128xf32> to vector<128x128xf32>
    %cst_9 = arith.constant dense<0.000000e+00> : vector<8x128xf32>
    %10 = tpu.matmul %7, %9, %cst_9 {dimension_numbers = #tpu.dot_dimension_numbers<[1], [0], [0], [1], [0, 0, 1, 1], [], []>} : vector<8x128xf32>, vector<128x128xf32>, vector<8x128xf32> -> vector<8x128xf32>
    %c1 = arith.constant 1 : index
    %c0_10 = arith.constant 0 : index
    %11 = vector.load %arg3[%c1, %c0_10] : memref<2x128xf32, #tpu.memory_space<vmem>>, vector<1x128xf32>
    %12 = vector.broadcast %11 : vector<1x128xf32> to vector<8x128xf32>
    %13 = arith.addf %10, %12 : vector<8x128xf32>
    %cst_11 = arith.constant 0.000000e+00 : f32
    %14 = vector.broadcast %cst_11 : f32 to vector<8x128xf32>
    %15 = arith.maximumf %13, %14 : vector<8x128xf32>
    %c0_12 = arith.constant 0 : index
    %c0_13 = arith.constant 0 : index
    %16 = vector.load %arg5[%c0_12, %c0_13] : memref<128x128xf32, #tpu.memory_space<vmem>>, vector<128x128xf32>
    %cst_14 = arith.constant dense<0.000000e+00> : vector<8x128xf32>
    %17 = tpu.matmul %15, %16, %cst_14 {dimension_numbers = #tpu.dot_dimension_numbers<[1], [0], [0], [1], [0, 0, 1, 1], [], []>} : vector<8x128xf32>, vector<128x128xf32>, vector<8x128xf32> -> vector<8x128xf32>
    %c0_15 = arith.constant 0 : index
    %c0_16 = arith.constant 0 : index
    %18 = vector.load %arg6[%c0_15, %c0_16] : memref<1x128xf32, #tpu.memory_space<vmem>>, vector<1x128xf32>
    %19 = vector.broadcast %18 : vector<1x128xf32> to vector<8x128xf32>
    %20 = arith.addf %17, %19 : vector<8x128xf32>
    %c0_17 = arith.constant 0 : index
    %c0_18 = arith.constant 0 : index
    %21 = vector.load %arg7[%c0_17, %c0_18] : memref<8x128xf32, #tpu.memory_space<vmem>>, vector<8x128xf32>
    tpu.vector_store %arg7[%c0_17, %c0_18], %20 {strides = array<i32>} : memref<8x128xf32, #tpu.memory_space<vmem>>, vector<8x128xf32>,
    return
  }
  func.func @transform_0(%arg0: i32) -> (i32, i32) {
    %c0_i32 = arith.constant 0 : i32
    %c0_i32_0 = arith.constant 0 : i32
    return %arg0, %c0_i32 : i32, i32
  }
  func.func @transform_1(%arg0: i32) -> (i32, i32) {
    %c0_i32 = arith.constant 0 : i32
    %c0_i32_0 = arith.constant 0 : i32
    %c0_i32_1 = arith.constant 0 : i32
    return %c0_i32, %c0_i32_0 : i32, i32
  }
  func.func @transform_2(%arg0: i32) -> (i32, i32) {
    %c0_i32 = arith.constant 0 : i32
    %c0_i32_0 = arith.constant 0 : i32
    %c0_i32_1 = arith.constant 0 : i32
    return %c0_i32, %c0_i32_0 : i32, i32
  }
  func.func @transform_3(%arg0: i32) -> (i32, i32, i32) {
    %c0_i32 = arith.constant 0 : i32
    %c0_i32_0 = arith.constant 0 : i32
    %c0_i32_1 = arith.constant 0 : i32
    %c0_i32_2 = arith.constant 0 : i32
    return %c0_i32, %c0_i32_0, %c0_i32_1 : i32, i32, i32
  }
  func.func @transform_4(%arg0: i32) -> (i32, i32) {
    %c0_i32 = arith.constant 0 : i32
    %c0_i32_0 = arith.constant 0 : i32
    %c0_i32_1 = arith.constant 0 : i32
    return %c0_i32, %c0_i32_0 : i32, i32
  }
  func.func @transform_5(%arg0: i32) -> (i32, i32) {
    %c0_i32 = arith.constant 0 : i32
    %c0_i32_0 = arith.constant 0 : i32
    %c0_i32_1 = arith.constant 0 : i32
    return %c0_i32, %c0_i32_0 : i32, i32
  }
  func.func @transform_6(%arg0: i32) -> (i32, i32) {
    %c0_i32 = arith.constant 0 : i32
    %c0_i32_0 = arith.constant 0 : i32
    return %arg0, %c0_i32 : i32, i32
  }
}

</mosaic_0001>

<bundles_post_ra>
// kernel: dqn_forward.1
= control target key start
LH: loop header
LB: loop body
LE: loop exit
PB: predicated region body
PF: predicated region fallthrough
CT: control target
= control target key end

     0   :  { %11 = vsyncpa [#allocation3], 0  ;;  %s699_s0 = inlined_call_operand.vmem [shape: f32[8,128], index: 0, kind: input, shape index: {}]   ;;  %s700_s1 = inlined_call_operand.hbm [shape: f32[128,128], index: 1, kind: input, shape index: {}]   ;;  %s701_s2 = inlined_call_operand.vmem [shape: f32[2,128], index: 2, kind: input, shape index: {}]   ;;  %s702_s3 = inlined_call_operand.hbm [shape: f32[1,128,128], index: 3, kind: input, shape index: {}]   ;;  %s703_s4 = inlined_call_operand.hbm [shape: f32[128,128], index: 4, kind: input, shape index: {}]   ;;  %s704_s5 = inlined_call_operand.vmem [shape: f32[1,128], index: 5, kind: input, shape index: {}]   ;;  %s705_s6 = inlined_call_operand.vmem [shape: f32[8,128], index: 6, kind: output, shape index: {}]  }
   0x1   :  { %12 = vsyncpa [#allocation5], 0  ;;  %s579_s21 = smov [#allocation4]   ;;  %s580_s23 = smov [#allocation2]  }
   0x2   :  { %s34_s22 = sshll.u32 %s579_s21, 4  ;;  %s20_s24 = sshll.u32 %s580_s23, 4  ;;  %s35_s22 = int_to_ptr.vmem [resolvable:$true] %s34_s22  ;;  %s21_s24 = int_to_ptr.vmem [resolvable:$true] %s20_s24 }
   0x3   :  { %s523_s25 = scalar_lea.vmem %s35_s22, 2048  ;;  %p528_p1 = scmp.lt.s32.totalorder %s35_s22, %s35_s22 }
   0x4   :  { %p524_p0 = scmp.ne.s32.totalorder %s35_s22, %s523_s25  ;;  %p529_p2 = scmp.lt.s32.totalorder %s523_s25, %s523_s25 }
   0x6   :  { %p530_p3 = por %p529_p2, %p528_p1 }
   0x8   :  { %p531_p4 = pnand %p530_p3, %p524_p0 }
   0xa   :  { %534 = shalt.err (!%p531_p4)
}
   0xb   :  { %s581_s26 = smov 128   ;;  %s582_s27 = smov 8  }
   0xc   :  { %40 = dma.hbm_to_vmem [thread:$0]  %s702_s3, 2048, %s35_s22, [#allocation5], %s581_s26, %s581_s26, %s582_s27  }
   0xd   :  { %s543_s30 = scalar_lea.vmem %s21_s24, 2048  ;;  %p548_p6 = scmp.lt.s32.totalorder %s21_s24, %s21_s24 }
   0xe   :  { %p544_p5 = scmp.ne.s32.totalorder %s21_s24, %s543_s30  ;;  %p549_p7 = scmp.lt.s32.totalorder %s543_s30, %s543_s30 }
  0x10   :  { %p550_p8 = por %p549_p7, %p548_p6 }
  0x12   :  { %p551_p9 = pnand %p550_p8, %p544_p5 }
  0x14   :  { %554 = shalt.err (!%p551_p9)
}
  0x15   :  { %26 = dma.hbm_to_vmem [thread:$0]  %s700_s1, 2048, %s21_s24, [#allocation3], %s581_s26, %s581_s26, %s582_s27  }
  0x16   :  { %s583_s9 = smov [#allocation6]  }
  0x17   :  { %s46_s10 = sshll.u32 %s583_s9, 4  ;;  %s47_s10 = int_to_ptr.vmem [resolvable:$true] %s46_s10 }
  0x18   :  { %s563_s11 = scalar_lea.vmem %s47_s10, 2048  ;;  %p568_p11 = scmp.lt.s32.totalorder %s47_s10, %s47_s10 }
  0x19   :  { %p564_p10 = scmp.ne.s32.totalorder %s47_s10, %s563_s11  ;;  %p569_p12 = scmp.lt.s32.totalorder %s563_s11, %s563_s11 }
  0x1b   :  { %p570_p13 = por %p569_p12, %p568_p11 }
  0x1d   :  { %p571_p0 = pnand %p570_p13, %p564_p10 }
  0x1f   :  { %574 = shalt.err (!%p571_p0)
}
  0x20   :  { %52 = dma.hbm_to_vmem [thread:$0]  %s703_s4, 2048, %s47_s10, [#allocation5], %s581_s26, %s581_s26, %s582_s27  }
  0x21   :  { %575 = dma.done.wait [#allocation3], 2048  }
  0x22   :  { %576 = vsyncadd [#allocation3], 4294965248 }
  0x23   :  { %577 = dma.done.wait [#allocation5], 4096  }
  0x24   :  { %578 = vsyncadd [#allocation5], 4294963200  ;;  %v584_v0 = vmov 0.0   ;;  %vm585_vm0 = vmmov 0   ;;  %v80_v1 = vld [vmem:[#allocation2 + $0x78] sm:$0xff]  ;;  %v79_v2 = vld [vmem:[#allocation2 + $0x70] sm:$0xff] }
  0x25   :  { %403 = vmatprep.subr.mxu0 %v584_v0  ;;  %435 = vmatprep.mubr.msk.f32.mxu0 %vm585_vm0, %v584_v0  ;;  %v78_v3 = vld [vmem:[#allocation2 + $0x68] sm:$0xff]  ;;  %v77_v4 = vld [vmem:[#allocation2 + $0x60] sm:$0xff]  ;;  %v172_v5 = vld [vmem:[#allocation4 + $0x78] sm:$0xff] }
  0x26   :  { %438 = vmatprep.subr.mxu1 %v584_v0  ;;  %470 = vmatprep.mubr.msk.f32.mxu1 %vm585_vm0, %v584_v0  ;;  %v76_v6 = vld [vmem:[#allocation2 + $0x58] sm:$0xff]  ;;  %v171_v7 = vld [vmem:[#allocation4 + $0x70] sm:$0xff]  ;;  %v170_v8 = vld [vmem:[#allocation4 + $0x68] sm:$0xff] }
  0x27   :  { %404 = vmatpush3.msra.mxu0 %v80_v1  ;;  %439 = vmatpush3.msra.mxu1 %v172_v5  ;;  %v75_v9 = vld [vmem:[#allocation2 + $0x50] sm:$0xff]  ;;  %v169_v10 = vld [vmem:[#allocation4 + $0x60] sm:$0xff]  ;;  %v74_v11 = vld [vmem:[#allocation2 + $0x48] sm:$0xff] }
  0x28   :  { %405 = vmatprep.subr.mxu0 %v584_v0  ;;  %440 = vmatprep.subr.mxu1 %v584_v0  ;;  %v168_v12 = vld [vmem:[#allocation4 + $0x58] sm:$0xff]  ;;  %v73_v13 = vld [vmem:[#allocation2 + $0x40] sm:$0xff]  ;;  %v167_v14 = vld [vmem:[#allocation4 + $0x50] sm:$0xff] }
  0x29   :  { %406 = vmatpush3.msra.mxu0 %v79_v2  ;;  %441 = vmatpush3.msra.mxu1 %v171_v7  ;;  %v72_v15 = vld [vmem:[#allocation2 + $0x38] sm:$0xff]  ;;  %v166_v16 = vld [vmem:[#allocation4 + $0x48] sm:$0xff]  ;;  %v71_v17 = vld [vmem:[#allocation2 + $0x30] sm:$0xff] }
  0x2a   :  { %407 = vmatprep.subr.mxu0 %v584_v0  ;;  %442 = vmatprep.subr.mxu1 %v584_v0  ;;  %v165_v18 = vld [vmem:[#allocation4 + $0x40] sm:$0xff]  ;;  %v70_v19 = vld [vmem:[#allocation2 + $0x28] sm:$0xff]  ;;  %v164_v20 = vld [vmem:[#allocation4 + $0x38] sm:$0xff] }
  0x2b   :  { %408 = vmatpush3.msra.mxu0 %v78_v3  ;;  %443 = vmatpush3.msra.mxu1 %v170_v8  ;;  %v69_v21 = vld [vmem:[#allocation2 + $0x20] sm:$0xff]  ;;  %v163_v22 = vld [vmem:[#allocation4 + $0x30] sm:$0xff]  ;;  %v68_v23 = vld [vmem:[#allocation2 + $0x18] sm:$0xff] }
  0x2c   :  { %409 = vmatprep.subr.mxu0 %v584_v0  ;;  %444 = vmatprep.subr.mxu1 %v584_v0  ;;  %v162_v24 = vld [vmem:[#allocation4 + $0x28] sm:$0xff]  ;;  %v67_v25 = vld [vmem:[#allocation2 + $0x10] sm:$0xff]  ;;  %v161_v26 = vld [vmem:[#allocation4 + $0x20] sm:$0xff] }
  0x2d   :  { %410 = vmatpush3.msra.mxu0 %v77_v4  ;;  %445 = vmatpush3.msra.mxu1 %v169_v10  ;;  %v66_v27 = vld [vmem:[#allocation2 + $0x8] sm:$0xff]  ;;  %v160_v28 = vld [vmem:[#allocation4 + $0x18] sm:$0xff]  ;;  %v65_v29 = vld [vmem:[#allocation2] sm:$0xff] }
  0x2e   :  { %411 = vmatprep.subr.mxu0 %v584_v0  ;;  %446 = vmatprep.subr.mxu1 %v584_v0  ;;  %v64_v30 = vld [vmem:[%s699_s0] sm:$0xff]  ;;  %v159_v31 = vld [vmem:[#allocation4 + $0x10] sm:$0xff]  ;;  %v158_v32 = vld [vmem:[#allocation4 + $0x8] sm:$0xff] }
  0x2f   :  { %412 = vmatpush3.msra.mxu0 %v76_v6  ;;  %447 = vmatpush3.msra.mxu1 %v168_v12  ;;  %v157_v33 = vld [vmem:[#allocation4] sm:$0xff]  ;;  %v264_v34 = vld [vmem:[#allocation6 + $0x78] sm:$0xff]  ;;  %v263_v35 = vld [vmem:[#allocation6 + $0x70] sm:$0xff] }
  0x30   :  { %413 = vmatprep.subr.mxu0 %v584_v0  ;;  %448 = vmatprep.subr.mxu1 %v584_v0  ;;  %v262_v36 = vld [vmem:[#allocation6 + $0x68] sm:$0xff]  ;;  %v261_v37 = vld [vmem:[#allocation6 + $0x60] sm:$0xff]  ;;  %v260_v38 = vld [vmem:[#allocation6 + $0x58] sm:$0xff] }
  0x31   :  { %414 = vmatpush3.msra.mxu0 %v75_v9  ;;  %449 = vmatpush3.msra.mxu1 %v167_v14  ;;  %v259_v39 = vld [vmem:[#allocation6 + $0x50] sm:$0xff]  ;;  %v258_v40 = vld [vmem:[#allocation6 + $0x48] sm:$0xff]  ;;  %v257_v41 = vld [vmem:[#allocation6 + $0x40] sm:$0xff] }
  0x32   :  { %415 = vmatprep.subr.mxu0 %v584_v0  ;;  %450 = vmatprep.subr.mxu1 %v584_v0  ;;  %v256_v42 = vld [vmem:[#allocation6 + $0x38] sm:$0xff]  ;;  %v255_v43 = vld [vmem:[#allocation6 + $0x30] sm:$0xff]  ;;  %v254_v44 = vld [vmem:[#allocation6 + $0x28] sm:$0xff] }
  0x33   :  { %416 = vmatpush3.msra.mxu0 %v74_v11  ;;  %451 = vmatpush3.msra.mxu1 %v166_v16  ;;  %v253_v45 = vld [vmem:[#allocation6 + $0x20] sm:$0xff]  ;;  %v252_v46 = vld [vmem:[#allocation6 + $0x18] sm:$0xff]  ;;  %v251_v52 = vld [vmem:[#allocation6 + $0x10] sm:$0xff] }
  0x34   :  { %417 = vmatprep.subr.mxu0 %v584_v0  ;;  %452 = vmatprep.subr.mxu1 %v584_v0  ;;  %v349_v47 = vld [vmem:[%s701_s2] ss:$0 sm:$0xff]  ;;  %v250_v53 = vld [vmem:[#allocation6 + $0x8] sm:$0xff]  ;;  %v350_v55 = vld [vmem:[%s701_s2 + $0x1] ss:$0 sm:$0xff] }
  0x35   :  { %418 = vmatpush3.msra.mxu0 %v73_v13  ;;  %453 = vmatpush3.msra.mxu1 %v165_v18  ;;  %v249_v54 = vld [vmem:[#allocation6] sm:$0xff] }
  0x36   :  { %419 = vmatprep.subr.mxu0 %v584_v0  ;;  %454 = vmatprep.subr.mxu1 %v584_v0  ;;  %v351_v60 = vld [vmem:[%s704_s5] ss:$0 sm:$0xff] }
  0x37   :  { %420 = vmatpush3.msra.mxu0 %v72_v15  ;;  %455 = vmatpush3.msra.mxu1 %v164_v20 }
  0x38   :  { %421 = vmatprep.subr.mxu0 %v584_v0  ;;  %456 = vmatprep.subr.mxu1 %v584_v0 }
  0x39   :  { %422 = vmatpush3.msra.mxu0 %v71_v17  ;;  %457 = vmatpush3.msra.mxu1 %v163_v22 }
  0x3a   :  { %423 = vmatprep.subr.mxu0 %v584_v0  ;;  %458 = vmatprep.subr.mxu1 %v584_v0 }
  0x3b   :  { %424 = vmatpush3.msra.mxu0 %v70_v19  ;;  %459 = vmatpush3.msra.mxu1 %v162_v24 }
  0x3c   :  { %425 = vmatprep.subr.mxu0 %v584_v0  ;;  %460 = vmatprep.subr.mxu1 %v584_v0 }
  0x3d   :  { %426 = vmatpush3.msra.mxu0 %v69_v21  ;;  %461 = vmatpush3.msra.mxu1 %v161_v26 }
  0x3e   :  { %427 = vmatprep.subr.mxu0 %v584_v0  ;;  %462 = vmatprep.subr.mxu1 %v584_v0 }
  0x3f   :  { %428 = vmatpush3.msra.mxu0 %v68_v23  ;;  %463 = vmatpush3.msra.mxu1 %v160_v28 }
  0x40   :  { %429 = vmatprep.subr.mxu0 %v584_v0  ;;  %464 = vmatprep.subr.mxu1 %v584_v0 }
  0x41   :  { %430 = vmatpush3.msra.mxu0 %v67_v25  ;;  %465 = vmatpush3.msra.mxu1 %v159_v31 }
  0x42   :  { %431 = vmatprep.subr.mxu0 %v584_v0  ;;  %466 = vmatprep.subr.mxu1 %v584_v0 }
  0x43   :  { %432 = vmatpush3.msra.mxu0 %v66_v27  ;;  %467 = vmatpush3.msra.mxu1 %v158_v32 }
  0x44   :  { %433 = vmatprep.subr.mxu0 %v584_v0  ;;  %468 = vmatprep.subr.mxu1 %v584_v0 }
  0x45   :  { %434 = vmatpush3.msra.mxu0 %v65_v29  ;;  %469 = vmatpush3.msra.mxu1 %v157_v33 }
  0x46   :  { %436 = vmatmul.mubr.f32.vlgmr.msra.gmra.mxu0 %v64_v30  ;;  %473 = vmatprep.subr.mxu0 %v584_v0 }
  0x47   :  { %505 = vmatprep.mubr.msk.f32.mxu0 %vm585_vm0, %v584_v0  ;;  %474 = vmatpush3.msra.mxu0 %v264_v34 }
  0x48   :  { %475 = vmatprep.subr.mxu0 %v584_v0 }
  0x49   :  { %476 = vmatpush3.msra.mxu0 %v263_v35 }
  0x4a   :  { %477 = vmatprep.subr.mxu0 %v584_v0 }
  0x4b   :  { %478 = vmatpush3.msra.mxu0 %v262_v36 }
  0x4c   :  { %479 = vmatprep.subr.mxu0 %v584_v0 }
  0x4d   :  { %480 = vmatpush3.msra.mxu0 %v261_v37 }
  0x4e   :  { %481 = vmatprep.subr.mxu0 %v584_v0 }
  0x4f   :  { %482 = vmatpush3.msra.mxu0 %v260_v38 }
  0x50   :  { %483 = vmatprep.subr.mxu0 %v584_v0 }
  0x51   :  { %484 = vmatpush3.msra.mxu0 %v259_v39 }
  0x52   :  { %485 = vmatprep.subr.mxu0 %v584_v0 }
  0x53   :  { %486 = vmatpush3.msra.mxu0 %v258_v40 }
  0x54   :  { %487 = vmatprep.subr.mxu0 %v584_v0 }
  0x55   :  { %488 = vmatpush3.msra.mxu0 %v257_v41 }
  0x56   :  { %489 = vmatprep.subr.mxu0 %v584_v0 }
  0x57   :  { %490 = vmatpush3.msra.mxu0 %v256_v42 }
  0x58   :  { %491 = vmatprep.subr.mxu0 %v584_v0 }
  0x59   :  { %492 = vmatpush3.msra.mxu0 %v255_v43 }
  0x5a   :  { %493 = vmatprep.subr.mxu0 %v584_v0 }
  0x5b   :  { %494 = vmatpush3.msra.mxu0 %v254_v44 }
  0x5c   :  { %495 = vmatprep.subr.mxu0 %v584_v0 }
  0x5d   :  { %496 = vmatpush3.msra.mxu0 %v253_v45 }
  0x5e   :  { %497 = vmatprep.subr.mxu0 %v584_v0 }
  0x5f   :  { %498 = vmatpush3.msra.mxu0 %v252_v46 }
  0x60   :  { %499 = vmatprep.subr.mxu0 %v584_v0 }
  0x61   :  { %500 = vmatpush3.msra.mxu0 %v251_v52 }
  0x62   :  { %501 = vmatprep.subr.mxu0 %v584_v0 }
  0x63   :  { %502 = vmatpush3.msra.mxu0 %v250_v53 }
  0x64   :  { %503 = vmatprep.subr.mxu0 %v584_v0 }
  0x65   :  { %504 = vmatpush3.msra.mxu0 %v249_v54 }
 0x106   :  { %v152_v48 = vpop.f32.mrf.mxu0 }
 0x107   :  { %v153_v49 = vadd.f32 %v349_v47, %v152_v48 }
 0x108   :  { %v437_v50 = vpop.f32.mrf.mxu0 }
 0x109   :  { %v156_v51 = vmax.f32 %v153_v49, 0.0 }
 0x10b   :  { %471 = vmatmul.mubr.f32.vlgmr.msra.gmra.mxu1 %v156_v51 }
 0x1cb   :  { %v244_v56 = vpop.f32.mrf.mxu1 }
 0x1cc   :  { %v245_v57 = vadd.f32 %v350_v55, %v244_v56 }
 0x1cd   :  { %v472_v58 = vpop.f32.mrf.mxu1 }
 0x1ce   :  { %v248_v59 = vmax.f32 %v245_v57, 0.0 }
 0x1d0   :  { %506 = vmatmul.mubr.f32.vlgmr.msra.gmra.mxu0 %v248_v59 }
 0x290   :  { %v338_v61 = vpop.f32.mrf.mxu0 }
 0x291   :  { %v339_v62 = vadd.f32 %v351_v60, %v338_v61 }
 0x292   :  { %v507_v63 = vpop.f32.mrf.mxu0 }
 0x293   :  { %342 = vst [vmem:[%s705_s6] sm:$0xff] %v339_v62 }
 0x294   :  { %347 = vsyncpa [#allocation3], 1 }
 0x295   :  { %348 = vsyncpa [#allocation5], 1 }

</bundles_post_ra>
